<compile_context>
chip_gen: v7x
topology: tpu7x:2x2x1
jax: 0.10.0
libtpu: 0.0.40
codegen_flags: <defaults>
</compile_context>

<pallas_src>
import jax
import jax.numpy as jnp
from jax.experimental import pallas as pl
from jax.experimental.pallas import tpu as pltpu

_BN_EPS = 1e-5
_LEAKY_SLOPE = 0.01


def _round_up(x, m):
    return (x + m - 1) // m * m


def _cdiv(a, b):
    return (a + b - 1) // b


def _vmem_limit_bytes():
    """Per-generation scoped-VMEM limit (96 MiB on 128 MiB parts, 48 MiB on v7x)."""
    try:
        cap = int(pltpu.get_tpu_info().vmem_capacity_bytes)
    except Exception:
        cap = 64 * 1024 * 1024          # conservative fallback, safe on every generation
    return int(min(cap * 3 // 4, 96 * 1024 * 1024))


def _pick_tiles(m, k, cout, vmem_limit):
    """Balanced M tiles: tm multiple of 16 (bf16 packing), even tile count (2-way split)."""
    budget = max(vmem_limit // 2, 4 * 1024 * 1024)
    fixed = 2 * k * cout * 2 + 64 * 1024                 # double-buffered weights + slack
    per_row = 2 * (k * 2) + 2 * (cout * 2) + 4 * max(cout, 128)  # patches + y (2 bufs) + f32 acc
    cap = max(16, min(2048, (budget - fixed) // per_row))
    n_tiles = max(2, _cdiv(m, cap))
    if n_tiles % 2:
        n_tiles += 1                                     # even count -> megacore split of pass 1
    tm = _round_up(_cdiv(m, n_tiles), 16)
    return tm, n_tiles


def _im2col_stride2_pad1(x_nhwc, ho, wo):
    """3x3 stride-2 pad-1 patches -> [N*Ho*Wo, 9*Cin] bf16, K ordered (kh, kw, cin).
    No K zero-padding is stored in HBM (review item 2)."""
    n, h, w, c = x_nhwc.shape
    xp = jnp.pad(x_nhwc, ((0, 0), (1, 1), (1, 1), (0, 0)))
    pieces = []
    for kh in range(3):
        for kw in range(3):
            pieces.append(xp[:, kh:kh + 2 * ho:2, kw:kw + 2 * wo:2, :])
    patches = jnp.stack(pieces, axis=3)                  # [N, Ho, Wo, 9, Cin]
    return patches.reshape(n * ho * wo, 9 * c)


# ---- Pass 1: conv matmul, stage bf16 y, accumulate per-channel sum / sum-of-squares ----
def _conv_stage_stats_kernel(p_ref, w_ref, y_ref, sum_ref, sq_ref):
    i = pl.program_id(1)                                 # reduction ("arbitrary") axis
    y = jnp.dot(p_ref[...], w_ref[...], preferred_element_type=jnp.float32)
    y_ref[...] = y.astype(y_ref.dtype)                   # stage conv output (bf16, unpadded C)

    @pl.when(i == 0)
    def _():
        sum_ref[...] = jnp.zeros_like(sum_ref)
        sq_ref[...] = jnp.zeros_like(sq_ref)

    # Per-tile partial sums; broadcast over the accumulator's 8 sublane rows (the wrapper
    # reads row 0 of each core's slice).  Padded (zero) rows contribute exactly 0.
    sum_ref[...] += jnp.sum(y, axis=0, keepdims=True)[None]
    sq_ref[...] += jnp.sum(y * y, axis=0, keepdims=True)[None]


# ---- Pass 2: elementwise folded-BN affine + LeakyReLU on the staged conv output ----
def _norm_act_kernel(y_ref, a_ref, b_ref, o_ref):
    y = y_ref[...].astype(jnp.float32)
    yn = y * a_ref[...] + b_ref[...]
    o_ref[...] = jnp.where(yn > 0, yn, _LEAKY_SLOPE * yn).astype(o_ref.dtype)


@jax.jit
def down_block(x_nchw, conv_w, bn_gamma, bn_beta):
    """x_nchw: [N, Cin, H, W]; conv_w: [Cout, Cin, 3, 3]; bn_gamma/beta: [Cout].
    Returns (y, y), y: [N, Cout, Ho, Wo] float32."""
    n, cin, h, w = x_nchw.shape
    cout = conv_w.shape[0]
    ho = (h + 2 - 3) // 2 + 1
    wo = (w + 2 - 3) // 2 + 1
    m = n * ho * wo
    k = 9 * cin

    vmem_limit = _vmem_limit_bytes()
    tm, n_tiles = _pick_tiles(m, k, cout, vmem_limit)
    m_pad = tm * n_tiles
    n_half = n_tiles // 2

    # bf16 matmul operands (f32 accumulation in-kernel); no K/Cout padding stored in HBM.
    x_nhwc = jnp.transpose(x_nchw, (0, 2, 3, 1)).astype(jnp.bfloat16)
    patches = _im2col_stride2_pad1(x_nhwc, ho, wo)                   # [M, K] bf16
    patches = jnp.pad(patches, ((0, m_pad - m), (0, 0)))             # zero rows: inert
    w_mat = jnp.transpose(conv_w, (2, 3, 1, 0)).reshape(k, cout).astype(jnp.bfloat16)

    # ---- Pass 1: matmul + staging + batch statistics (2-way parallel for v7x) ----
    y_staged, s_part, sq_part = pl.pallas_call(
        _conv_stage_stats_kernel,
        out_shape=(jax.ShapeDtypeStruct((m_pad, cout), jnp.bfloat16),
                   jax.ShapeDtypeStruct((2, 8, cout), jnp.float32),
                   jax.ShapeDtypeStruct((2, 8, cout), jnp.float32)),
        grid=(2, n_half),
        in_specs=[pl.BlockSpec((tm, k), lambda c, i: (c * n_half + i, 0)),
                  pl.BlockSpec((k, cout), lambda c, i: (0, 0))],
        out_specs=(pl.BlockSpec((tm, cout), lambda c, i: (c * n_half + i, 0)),
                   pl.BlockSpec((1, 8, cout), lambda c, i: (c, 0, 0)),
                   pl.BlockSpec((1, 8, cout), lambda c, i: (c, 0, 0))),
        compiler_params=pltpu.CompilerParams(
            dimension_semantics=("parallel", "arbitrary"),
            vmem_limit_bytes=vmem_limit),
    )(patches, w_mat)

    # Fold BN (training-mode biased variance) into one per-channel scale/shift.
    s = s_part[:, 0, :].sum(axis=0)
    sq = sq_part[:, 0, :].sum(axis=0)
    inv_m = 1.0 / float(m)
    mean = s * inv_m
    var = jnp.maximum(sq * inv_m - mean * mean, 0.0)
    a = (bn_gamma.astype(jnp.float32) * jax.lax.rsqrt(var + _BN_EPS)).reshape(1, cout)
    b = (bn_beta.astype(jnp.float32) - mean * a[0]).reshape(1, cout)

    # ---- Pass 2: elementwise normalize + LeakyReLU over the staged conv output ----
    out_flat = pl.pallas_call(
        _norm_act_kernel,
        out_shape=jax.ShapeDtypeStruct((m_pad, cout), jnp.bfloat16),
        grid=(n_tiles,),
        in_specs=[pl.BlockSpec((tm, cout), lambda i: (i, 0)),
                  pl.BlockSpec((1, cout), lambda i: (0, 0)),
                  pl.BlockSpec((1, cout), lambda i: (0, 0))],
        out_specs=pl.BlockSpec((tm, cout), lambda i: (i, 0)),
        compiler_params=pltpu.CompilerParams(
            dimension_semantics=("parallel",),
            vmem_limit_bytes=vmem_limit),
    )(y_staged, a, b)

    # Small bf16 y -> f32 NCHW; XLA fuses the cast into the transpose.
    y = out_flat[:m].astype(jnp.float32).reshape(n, ho, wo, cout).transpose(0, 3, 1, 2)
    return (y, y)


if __name__ == "__main__":
    key = jax.random.PRNGKey(0)
    k_x, k_w = jax.random.split(key)

    N, Cin, H, W = 2, 4, 16, 16
    Cout = 8

    x = jax.random.normal(k_x, (N, Cin, H, W), dtype=jnp.float32)
    fan_in = Cin * 3 * 3
    conv_w = jax.random.normal(k_w, (Cout, Cin, 3, 3), dtype=jnp.float32) * (2.0 / fan_in) ** 0.5
    gamma = jnp.ones((Cout,), dtype=jnp.float32)
    beta = jnp.zeros((Cout,), dtype=jnp.float32)

    y1, y2 = down_block(x, conv_w, gamma, beta)
    jax.block_until_ready(y1)
    jax.block_until_ready(y2)

    assert y1.shape == (N, Cout, H // 2, W // 2), y1.shape
    assert y2.shape == (N, Cout, H // 2, W // 2), y2.shape
    print("KERNEL_OK")
</pallas_src>

<mosaic_0001>
module attributes {stable_mosaic.version = 11 : i64} {
  func.func @_conv_stage_stats_kernel(%arg0: i32, %arg1: i32, %arg2: memref<64x36xbf16, #tpu.memory_space<vmem>>, %arg3: memref<36x8xbf16, #tpu.memory_space<vmem>>, %arg4: memref<64x8xbf16, #tpu.memory_space<vmem>>, %arg5: memref<1x8x8xf32, #tpu.memory_space<vmem>>, %arg6: memref<1x8x8xf32, #tpu.memory_space<vmem>>) attributes {dimension_semantics = [#tpu.dimension_semantics<parallel>, #tpu.dimension_semantics<arbitrary>], iteration_bounds = array<i64: 2, 1>, scalar_prefetch = 0 : i64, scratch_operands = 0 : i64, tpu.core_type = #tpu.core_type<tc>, window_params = [{transform_indices = @transform_0, window_bounds = array<i64: 64, 36>}, {pipeline_mode = #tpu.pipeline_mode<synchronous>, transform_indices = @transform_1, window_bounds = array<i64: 36, 8>}, {transform_indices = @transform_2, window_bounds = array<i64: 64, 8>}, {transform_indices = @transform_3, window_bounds = array<i64: 1, 8, 8>}, {transform_indices = @transform_4, window_bounds = array<i64: 1, 8, 8>}]} {
    %c0 = arith.constant 0 : index
    %c0_0 = arith.constant 0 : index
    %0 = vector.load %arg2[%c0, %c0_0] : memref<64x36xbf16, #tpu.memory_space<vmem>>, vector<64x36xbf16>
    %c0_1 = arith.constant 0 : index
    %c0_2 = arith.constant 0 : index
    %1 = vector.load %arg3[%c0_1, %c0_2] : memref<36x8xbf16, #tpu.memory_space<vmem>>, vector<36x8xbf16>
    %cst = arith.constant dense<0.000000e+00> : vector<64x8xf32>
    %2 = tpu.matmul %0, %1, %cst {dimension_numbers = #tpu.dot_dimension_numbers<[1], [0], [0], [1], [0, 0, 1, 1], [], []>} : vector<64x36xbf16>, vector<36x8xbf16>, vector<64x8xf32> -> vector<64x8xf32>
    %3 = arith.truncf %2 : vector<64x8xf32> to vector<64x8xbf16>
    %c0_3 = arith.constant 0 : index
    %c0_4 = arith.constant 0 : index
    %4 = vector.load %arg4[%c0_3, %c0_4] : memref<64x8xbf16, #tpu.memory_space<vmem>>, vector<64x8xbf16>
    tpu.vector_store %arg4[%c0_3, %c0_4], %3 {strides = array<i32>} : memref<64x8xbf16, #tpu.memory_space<vmem>>, vector<64x8xbf16>,
    %c0_i32 = arith.constant 0 : i32
    %5 = arith.cmpi eq, %arg1, %c0_i32 : i32
    %6 = arith.extui %5 : i1 to i32
    %c0_i32_5 = arith.constant 0 : i32
    %7 = arith.cmpi ne, %6, %c0_i32_5 : i32
    scf.if %7 {
      %cst_20 = arith.constant 0.000000e+00 : f32
      %23 = vector.broadcast %cst_20 : f32 to vector<1x8x8xf32>
      %c0_21 = arith.constant 0 : index
      %c0_22 = arith.constant 0 : index
      %c0_23 = arith.constant 0 : index
      %24 = vector.load %arg5[%c0_21, %c0_22, %c0_23] : memref<1x8x8xf32, #tpu.memory_space<vmem>>, vector<1x8x8xf32>
      tpu.vector_store %arg5[%c0_21, %c0_22, %c0_23], %23 {strides = array<i32>} : memref<1x8x8xf32, #tpu.memory_space<vmem>>, vector<1x8x8xf32>,
      %cst_24 = arith.constant 0.000000e+00 : f32
      %25 = vector.broadcast %cst_24 : f32 to vector<1x8x8xf32>
      %c0_25 = arith.constant 0 : index
      %c0_26 = arith.constant 0 : index
      %c0_27 = arith.constant 0 : index
      %26 = vector.load %arg6[%c0_25, %c0_26, %c0_27] : memref<1x8x8xf32, #tpu.memory_space<vmem>>, vector<1x8x8xf32>
      tpu.vector_store %arg6[%c0_25, %c0_26, %c0_27], %25 {strides = array<i32>} : memref<1x8x8xf32, #tpu.memory_space<vmem>>, vector<1x8x8xf32>,
    } else {
    }
    %c0_6 = arith.constant 0 : index
    %c0_7 = arith.constant 0 : index
    %c0_8 = arith.constant 0 : index
    %8 = vector.load %arg5[%c0_6, %c0_7, %c0_8] : memref<1x8x8xf32, #tpu.memory_space<vmem>>, vector<1x8x8xf32>
    %cst_9 = arith.constant dense<0.000000e+00> : vector<8xf32>
    %9 = vector.multi_reduction <add>, %2, %cst_9 [0] : vector<64x8xf32> to vector<8xf32>
    %10 = vector.shape_cast %9 : vector<8xf32> to vector<1x8xf32>
    %11 = vector.shape_cast %10 : vector<1x8xf32> to vector<1x1x8xf32>
    %12 = vector.broadcast %11 : vector<1x1x8xf32> to vector<1x8x8xf32>
    %13 = arith.addf %8, %12 : vector<1x8x8xf32>
    %c0_10 = arith.constant 0 : index
    %c0_11 = arith.constant 0 : index
    %c0_12 = arith.constant 0 : index
    %14 = vector.load %arg5[%c0_10, %c0_11, %c0_12] : memref<1x8x8xf32, #tpu.memory_space<vmem>>, vector<1x8x8xf32>
    tpu.vector_store %arg5[%c0_10, %c0_11, %c0_12], %13 {strides = array<i32>} : memref<1x8x8xf32, #tpu.memory_space<vmem>>, vector<1x8x8xf32>,
    %c0_13 = arith.constant 0 : index
    %c0_14 = arith.constant 0 : index
    %c0_15 = arith.constant 0 : index
    %15 = vector.load %arg6[%c0_13, %c0_14, %c0_15] : memref<1x8x8xf32, #tpu.memory_space<vmem>>, vector<1x8x8xf32>
    %16 = arith.mulf %2, %2 : vector<64x8xf32>
    %cst_16 = arith.constant dense<0.000000e+00> : vector<8xf32>
    %17 = vector.multi_reduction <add>, %16, %cst_16 [0] : vector<64x8xf32> to vector<8xf32>
    %18 = vector.shape_cast %17 : vector<8xf32> to vector<1x8xf32>
    %19 = vector.shape_cast %18 : vector<1x8xf32> to vector<1x1x8xf32>
    %20 = vector.broadcast %19 : vector<1x1x8xf32> to vector<1x8x8xf32>
    %21 = arith.addf %15, %20 : vector<1x8x8xf32>
    %c0_17 = arith.constant 0 : index
    %c0_18 = arith.constant 0 : index
    %c0_19 = arith.constant 0 : index
    %22 = vector.load %arg6[%c0_17, %c0_18, %c0_19] : memref<1x8x8xf32, #tpu.memory_space<vmem>>, vector<1x8x8xf32>
    tpu.vector_store %arg6[%c0_17, %c0_18, %c0_19], %21 {strides = array<i32>} : memref<1x8x8xf32, #tpu.memory_space<vmem>>, vector<1x8x8xf32>,
    return
  }
  func.func @transform_0(%arg0: i32, %arg1: i32) -> (i32, i32) {
    %c1_i32 = arith.constant 1 : i32
    %0 = arith.muli %arg0, %c1_i32 : i32
    %1 = arith.addi %0, %arg1 : i32
    %c0_i32 = arith.constant 0 : i32
    %c0_i32_0 = arith.constant 0 : i32
    return %1, %c0_i32 : i32, i32
  }
  func.func @transform_1(%arg0: i32, %arg1: i32) -> (i32, i32) {
    %c0_i32 = arith.constant 0 : i32
    %c0_i32_0 = arith.constant 0 : i32
    %c0_i32_1 = arith.constant 0 : i32
    return %c0_i32, %c0_i32_0 : i32, i32
  }
  func.func @transform_2(%arg0: i32, %arg1: i32) -> (i32, i32) {
    %c1_i32 = arith.constant 1 : i32
    %0 = arith.muli %arg0, %c1_i32 : i32
    %1 = arith.addi %0, %arg1 : i32
    %c0_i32 = arith.constant 0 : i32
    %c0_i32_0 = arith.constant 0 : i32
    return %1, %c0_i32 : i32, i32
  }
  func.func @transform_3(%arg0: i32, %arg1: i32) -> (i32, i32, i32) {
    %c0_i32 = arith.constant 0 : i32
    %c0_i32_0 = arith.constant 0 : i32
    %c0_i32_1 = arith.constant 0 : i32
    return %arg0, %c0_i32, %c0_i32_0 : i32, i32, i32
  }
  func.func @transform_4(%arg0: i32, %arg1: i32) -> (i32, i32, i32) {
    %c0_i32 = arith.constant 0 : i32
    %c0_i32_0 = arith.constant 0 : i32
    %c0_i32_1 = arith.constant 0 : i32
    return %arg0, %c0_i32, %c0_i32_0 : i32, i32, i32
  }
}

module attributes {stable_mosaic.version = 11 : i64} {
  func.func @_norm_act_kernel(%arg0: i32, %arg1: memref<64x8xbf16, #tpu.memory_space<vmem>>, %arg2: memref<1x8xf32, #tpu.memory_space<vmem>>, %arg3: memref<1x8xf32, #tpu.memory_space<vmem>>, %arg4: memref<64x8xbf16, #tpu.memory_space<vmem>>) attributes {dimension_semantics = [#tpu.dimension_semantics<parallel>], iteration_bounds = array<i64: 2>, scalar_prefetch = 0 : i64, scratch_operands = 0 : i64, tpu.core_type = #tpu.core_type<tc>, window_params = [{transform_indices = @transform_0, window_bounds = array<i64: 64, 8>}, {pipeline_mode = #tpu.pipeline_mode<synchronous>, transform_indices = @transform_1, window_bounds = array<i64: 1, 8>}, {pipeline_mode = #tpu.pipeline_mode<synchronous>, transform_indices = @transform_2, window_bounds = array<i64: 1, 8>}, {transform_indices = @transform_3, window_bounds = array<i64: 64, 8>}]} {
    %c0 = arith.constant 0 : index
    %c0_0 = arith.constant 0 : index
    %0 = vector.load %arg1[%c0, %c0_0] : memref<64x8xbf16, #tpu.memory_space<vmem>>, vector<64x8xbf16>
    %1 = arith.extf %0 : vector<64x8xbf16> to vector<64x8xf32>
    %c0_1 = arith.constant 0 : index
    %c0_2 = arith.constant 0 : index
    %2 = vector.load %arg2[%c0_1, %c0_2] : memref<1x8xf32, #tpu.memory_space<vmem>>, vector<1x8xf32>
    %3 = vector.broadcast %2 : vector<1x8xf32> to vector<64x8xf32>
    %4 = arith.mulf %1, %3 : vector<64x8xf32>
    %c0_3 = arith.constant 0 : index
    %c0_4 = arith.constant 0 : index
    %5 = vector.load %arg3[%c0_3, %c0_4] : memref<1x8xf32, #tpu.memory_space<vmem>>, vector<1x8xf32>
    %6 = vector.broadcast %5 : vector<1x8xf32> to vector<64x8xf32>
    %7 = arith.addf %4, %6 : vector<64x8xf32>
    %cst = arith.constant 0.000000e+00 : f32
    %8 = vector.broadcast %cst : f32 to vector<64x8xf32>
    %9 = arith.cmpf ogt, %7, %8 : vector<64x8xf32>
    %cst_5 = arith.constant 0.00999999977 : f32
    %10 = vector.broadcast %cst_5 : f32 to vector<64x8xf32>
    %11 = arith.mulf %10, %7 : vector<64x8xf32>
    %12 = arith.select %9, %7, %11 : vector<64x8xi1>, vector<64x8xf32>
    %13 = arith.truncf %12 : vector<64x8xf32> to vector<64x8xbf16>
    %c0_6 = arith.constant 0 : index
    %c0_7 = arith.constant 0 : index
    %14 = vector.load %arg4[%c0_6, %c0_7] : memref<64x8xbf16, #tpu.memory_space<vmem>>, vector<64x8xbf16>
    tpu.vector_store %arg4[%c0_6, %c0_7], %13 {strides = array<i32>} : memref<64x8xbf16, #tpu.memory_space<vmem>>, vector<64x8xbf16>,
    return
  }
  func.func @transform_0(%arg0: i32) -> (i32, i32) {
    %c0_i32 = arith.constant 0 : i32
    %c0_i32_0 = arith.constant 0 : i32
    return %arg0, %c0_i32 : i32, i32
  }
  func.func @transform_1(%arg0: i32) -> (i32, i32) {
    %c0_i32 = arith.constant 0 : i32
    %c0_i32_0 = arith.constant 0 : i32
    %c0_i32_1 = arith.constant 0 : i32
    return %c0_i32, %c0_i32_0 : i32, i32
  }
  func.func @transform_2(%arg0: i32) -> (i32, i32) {
    %c0_i32 = arith.constant 0 : i32
    %c0_i32_0 = arith.constant 0 : i32
    %c0_i32_1 = arith.constant 0 : i32
    return %c0_i32, %c0_i32_0 : i32, i32
  }
  func.func @transform_3(%arg0: i32) -> (i32, i32) {
    %c0_i32 = arith.constant 0 : i32
    %c0_i32_0 = arith.constant 0 : i32
    return %arg0, %c0_i32 : i32, i32
  }
}

</mosaic_0001>

<bundles_post_ra>
// kernel: down_block.3
= control target key start
LH: loop header
LB: loop body
LE: loop exit
PB: predicated region body
PF: predicated region fallthrough
CT: control target
= control target key end

     0   :  { %s425_s12 = smov 0   ;;  %s473_s0 = inlined_call_operand.vmem [shape: bf16[128,8], index: 0, kind: input, shape index: {}]   ;;  %s474_s1 = inlined_call_operand.vmem [shape: f32[1,8], index: 1, kind: input, shape index: {}]   ;;  %s475_s2 = inlined_call_operand.vmem [shape: f32[1,8], index: 2, kind: input, shape index: {}]   ;;  %s476_s3 = inlined_call_operand.vmem [shape: bf16[128,8], index: 3, kind: output, shape index: {}]  }
   0x1 LB: > { %s341_s13 = sadd.s32 4294967295, %s403_s12   ;;  %p345_p0 = scmp.ge.s32.totalorder %s403_s12, 1  ;;  %s403_s12 = sphi %s425_s12, %s13_s12  }
   0x2   : > { %p138_p1 = scmp.lt.s32.totalorder %s403_s12, 3 }
   0x4   : > { %p139_p2 = pnand %p345_p0, %p138_p1 }
   0x5   : > { %s346_s14 = sshll.u32 (!%p139_p2), %s341_s13, 3  ;;  %v350_v0 = vld [vmem:[%s474_s1] ss:$0 sm:$0xff] (!%p139_p2)  ;;  %vm276_vm0 = vcmask (!%p139_p2), 60416  }
   0x6   : > { %142 = sbr.rel (%p139_p2) target bundleno = 36 (0x24), region = 32  ;;  %p163_p3 = scmp.lt.s32.totalorder (!%p139_p2), %s346_s14, 15  ;;  %v351_v9 = vld [vmem:[%s475_s2] ss:$0 sm:$0xff] (!%p139_p2) }
   0xd   : > { %s478_s14 = smov (!%p163_p3, %s346_s14), 15 }
   0xe   : > { %s347_s15 = sshll.u32 %s478_s14, 2 }
   0xf   : > { %s166_s18 = scalar_lea.vmem %s473_s0, %s347_s15  ;;  %s452_s25 = scalar_lea.vmem %s476_s3, %s347_s15 }
  0x10   : > { %v371_v1 = vld [vmem:[%s166_s18] sm:$0xff]   ;;  %v386_v2 = vld [vmem:[%s166_s18 + $0x8] sm:$0xff]   ;;  %v387_v3 = vld [vmem:[%s166_s18 + $0x10] sm:$0xff]  }
  0x11   : > { %v372_v4 = vunpack.c.l.bf16 %v371_v1  ;;  %v373_v5 = vunpack.c.h.bf16 %v371_v1  ;;  %v376_v6 = vunpack.c.l.bf16 %v386_v2  ;;  %v377_v7 = vunpack.c.h.bf16 %v386_v2  ;;  %v388_v8 = vld [vmem:[%s166_s18 + $0x18] sm:$0xff]  }
  0x12   : > { %v380_v10 = vunpack.c.l.bf16 %v387_v3  ;;  %v381_v11 = vunpack.c.h.bf16 %v387_v3  ;;  %v384_v12 = vunpack.c.l.bf16 %v388_v8  ;;  %v385_v13 = vunpack.c.h.bf16 %v388_v8 }
  0x13   : > { %v197_v14 = vmul.f32 %v372_v4, %v350_v0  ;;  %v198_v15 = vmul.f32 %v373_v5, %v350_v0  ;;  %v199_v16 = vmul.f32 %v376_v6, %v350_v0  ;;  %v200_v17 = vmul.f32 %v377_v7, %v350_v0 }
  0x14   : > { %v201_v18 = vmul.f32 %v380_v10, %v350_v0  ;;  %v202_v19 = vmul.f32 %v381_v11, %v350_v0  ;;  %v203_v20 = vmul.f32 %v384_v12, %v350_v0  ;;  %v204_v21 = vmul.f32 %v385_v13, %v350_v0 }
  0x15   : > { %v212_v22 = vadd.f32 %v351_v9, %v197_v14  ;;  %v213_v23 = vadd.f32 %v351_v9, %v198_v15  ;;  %v214_v24 = vadd.f32 %v351_v9, %v199_v16  ;;  %v215_v25 = vadd.f32 %v351_v9, %v200_v17 }
  0x16   : > { %v216_v26 = vadd.f32 %v351_v9, %v201_v18  ;;  %v217_v27 = vadd.f32 %v351_v9, %v202_v19  ;;  %v218_v28 = vadd.f32 %v351_v9, %v203_v20  ;;  %v219_v29 = vadd.f32 %v351_v9, %v204_v21 }
  0x17   : > { %vm220_vm1 = vcmp.gt.f32.partialorder %v212_v22, 0.0  ;;  %v228_v30 = vmul.f32 0.01, %v212_v22  ;;  %vm221_vm2 = vcmp.gt.f32.partialorder %v213_v23, 0.0  ;;  %v229_v31 = vmul.f32 0.01, %v213_v23 }
  0x18   : > { %vm222_vm3 = vcmp.gt.f32.partialorder %v214_v24, 0.0  ;;  %v230_v32 = vmul.f32 0.01, %v214_v24  ;;  %vm223_vm4 = vcmp.gt.f32.partialorder %v215_v25, 0.0  ;;  %v231_v33 = vmul.f32 0.01, %v215_v25 }
  0x19   : > { %v236_v34 = vsel %vm220_vm1, %v212_v22, %v228_v30  ;;  %v237_v35 = vsel %vm221_vm2, %v213_v23, %v229_v31  ;;  %vm224_vm5 = vcmp.gt.f32.partialorder %v216_v26, 0.0  ;;  %v232_v36 = vmul.f32 0.01, %v216_v26 }
  0x1a   : > { %v362_v37 = vpack.c.bf16 %v236_v34, %v236_v34  ;;  %v363_v38 = vpack.c.bf16 %v237_v35, %v237_v35  ;;  %v238_v39 = vsel %vm222_vm3, %v214_v24, %v230_v32  ;;  %v239_v40 = vsel %vm223_vm4, %v215_v25, %v231_v33 }
  0x1b   : > { %v364_v41 = vpack.c.bf16 %v238_v39, %v238_v39  ;;  %v365_v42 = vpack.c.bf16 %v239_v40, %v239_v40  ;;  %v240_v43 = vsel %vm224_vm5, %v216_v26, %v232_v36  ;;  %vm225_vm6 = vcmp.gt.f32.partialorder %v217_v27, 0.0 }
  0x1c   : > { %277 = vst.msk [vmem:[%s452_s25] sm:$0xf] %vm276_vm0, %v362_v37  ;;  %278 = vst.msk [vmem:[%s452_s25 + $0x4] sm:$0xf] %vm276_vm0, %v363_v38  ;;  %v366_v44 = vpack.c.bf16 %v240_v43, %v240_v43  ;;  %v233_v45 = vmul.f32 0.01, %v217_v27 }
  0x1d   : > { %vm226_vm7 = vcmp.gt.f32.partialorder %v218_v28, 0.0  ;;  %v234_v46 = vmul.f32 0.01, %v218_v28  ;;  %279 = vst.msk [vmem:[%s452_s25 + $0x8] sm:$0xf] %vm276_vm0, %v364_v41  ;;  %vm227_vm8 = vcmp.gt.f32.partialorder %v219_v29, 0.0 }
  0x1e   : > { %280 = vst.msk [vmem:[%s452_s25 + $0xc] sm:$0xf] %vm276_vm0, %v365_v42  ;;  %v235_v47 = vmul.f32 0.01, %v219_v29  ;;  %281 = vst.msk [vmem:[%s452_s25 + $0x10] sm:$0xf] %vm276_vm0, %v366_v44  ;;  %v241_v48 = vsel %vm225_vm6, %v217_v27, %v233_v45 }
  0x1f   : > { %v242_v49 = vsel %vm226_vm7, %v218_v28, %v234_v46  ;;  %v367_v50 = vpack.c.bf16 %v241_v48, %v241_v48 }
  0x20   : > { %v368_v51 = vpack.c.bf16 %v242_v49, %v242_v49  ;;  %v243_v52 = vsel %vm227_vm8, %v219_v29, %v235_v47 }
  0x21   : > { %v369_v53 = vpack.c.bf16 %v243_v52, %v243_v52  ;;  %282 = vst.msk [vmem:[%s452_s25 + $0x14] sm:$0xf] %vm276_vm0, %v367_v50 }
  0x22   : > { %283 = vst.msk [vmem:[%s452_s25 + $0x18] sm:$0xf] %vm276_vm0, %v368_v51 }
  0x23   : > { %284 = vst.msk [vmem:[%s452_s25 + $0x1c] sm:$0xf] %vm276_vm0, %v369_v53 }
  0x24 PF: > { %s13_s12 = sadd.s32 1, %s403_s12  }
  0x25   : > { %p10_p4 = scmp.ge.s32.totalorder %s13_s12, 4  }
  0x27   :  { %12 = sbr.rel (!%p10_p4) target bundleno = 1 (0x1), region = 62 }

// kernel: down_block.2
= control target key start
LH: loop header
LB: loop body
LE: loop exit
PB: predicated region body
PF: predicated region fallthrough
CT: control target
= control target key end

     0   :  { %s763_s15 = smov 0   ;;  %s765_s16 = smov 0   ;;  %s867_s0 = inlined_call_operand.vmem [shape: bf16[128,36], index: 0, kind: input, shape index: {}]   ;;  %s868_s1 = inlined_call_operand.vmem [shape: bf16[36,8], index: 1, kind: input, shape index: {}]   ;;  %s869_s2 = inlined_call_operand.vmem [shape: bf16[128,8], index: 2, kind: output, shape index: {0}]   ;;  %s870_s3 = inlined_call_operand.vmem [shape: f32[2,8,8], index: 3, kind: output, shape index: {1}]   ;;  %s871_s4 = inlined_call_operand.vmem [shape: f32[2,8,8], index: 4, kind: output, shape index: {2}]  }
   0x1   :  { %s767_s17 = smov 0  }
   0x2 LB: > { %s27_s18 = sadd.s32 1, %s731_s16  ;;  %p616_p0 = scmp.ge.s32.totalorder %s735_s17, 1  ;;  %s735_s17 = sphi %s767_s17, %s15_s17   ;;  %s731_s16 = sphi %s765_s16, %s873_s16   ;;  %s727_s15 = sphi %s763_s15, %s872_s15  }
   0x3   : > { %p29_p1 = scmp.ge.s32.totalorder %s27_s18, 2  ;;  %p186_p2 = scmp.lt.s32.totalorder %s735_s17, 3 }
   0x5   : > { %s875_s18 = smov (%p29_p1, %s27_s18), 0  ;;  %p187_p3 = pnand %p616_p0, %p186_p2 }
   0x6   : > { %v706_v0 = vld [vmem:[%s868_s1] sm:$0xff] (!%p187_p3)   ;;  %v707_v1 = vld [vmem:[%s868_s1 + $0x8] sm:$0xff] (!%p187_p3)   ;;  %s617_s23 = sshll.u32 (!%p187_p3), %s727_s15, 3  ;;  %v708_v2 = vld [vmem:[%s868_s1 + $0x10] ss:$0 sps:$4 sm:$0x33] (!%p187_p3)  }
   0x7   : > { %190 = sbr.rel (%p187_p3) target bundleno = 266 (0x10a), region = 28  ;;  %659 = vmatprep.subr.bf16.mxu0 (!%p187_p3), %v706_v0  ;;  %673 = vmatprep.subr.bf16.mxu1 (!%p187_p3), %v706_v0  ;;  %p224_p4 = scmp.lt.s32.totalorder (!%p187_p3), %s617_s23, 15  ;;  %vm308_vm0 = vcmask (!%p187_p3), 1041408   ;;  %vm295_vm1 = vcmask (!%p187_p3), 293888   ;;  %vm422_vm2 = vcmask (!%p187_p3), 64512   ;;  %v737_v8 = vmov (!%p187_p3), 0.0  }
   0x8   : > { %660 = vmatpush3.bf16.msra.mxu0 (!%p187_p3), %v706_v0  ;;  %676 = vmatpush3.bf16.msra.mxu1 (!%p187_p3), %v706_v0  ;;  %v310_v3 = vsel (!%p187_p3), %vm308_vm0, %v708_v2, 0  ;;  %p238_p5 = scmp.lt.s32.totalorder (!%p187_p3), %s727_s15, 1  ;;  %vm409_vm3 = vcmask (!%p187_p3), 60416  }
   0x9   : > { %661 = vmatprep.subr.bf16.mxu0 (!%p187_p3), %v707_v1  ;;  %674 = vmatprep.subr.bf16.mxu1 (!%p187_p3), %v707_v1 }
   0xc   : > { %662 = vmatpush3.bf16.msra.mxu0 (!%p187_p3), %v707_v1  ;;  %677 = vmatpush3.bf16.msra.mxu1 (!%p187_p3), %v707_v1 }
   0xd   : > { %679 = vmatprep.subr.msk.bf16.mxu0 (!%p187_p3), %vm308_vm0, %v708_v2  ;;  %680 = vmatprep.subr.msk.bf16.mxu1 (!%p187_p3), %vm308_vm0, %v708_v2 }
   0xe   : > { %s877_s23 = smov (!%p224_p4, %s617_s23), 15  ;;  %s879_s15 = smov (!%p238_p5, %s727_s15), 1 }
   0xf   : > { %s618_s26 = sshll.u32 %s877_s23, 2  ;;  %s621_s30 = sshll.u32 %s879_s15, 3 }
  0x10   : > { %s227_s29 = scalar_lea.vmem %s867_s0, %s618_s26  ;;  %664 = vmatpush3.bf16.msra.mxu0 %v310_v3  ;;  %678 = vmatpush3.bf16.msra.mxu1 %v310_v3  ;;  %s804_s7 = scalar_lea.vmem %s870_s3, %s621_s30 }
  0x11   : > { %v709_v4 = vld [vmem:[%s227_s29] sm:$0xff]   ;;  %v710_v5 = vld [vmem:[%s227_s29 + $0x8] sm:$0xff]   ;;  %v711_v6 = vld [vmem:[%s227_s29 + $0x10] sm:$0xff]   ;;  %s809_s10 = scalar_lea.vmem %s871_s4, %s621_s30  ;;  %423 = vst.msk [vmem:[%s804_s7] sm:$0xff] %vm422_vm2, %v737_v8  ;;  %s818_s13 = scalar_lea.vmem %s869_s2, %s618_s26 }
  0x12   : > { %665 = vmatprep.mubr.msk.bf16.mxu0 %vm295_vm1, %v709_v4  ;;  %v712_v7 = vld [vmem:[%s227_s29 + $0x18] sm:$0xff]   ;;  %669 = vmatprep.mubr.msk.bf16.mxu1 %vm295_vm1, %v711_v6  ;;  %424 = vst.msk [vmem:[%s809_s10] sm:$0xff] %vm422_vm2, %v737_v8 }
  0x13   : > { %666 = vmatmul.mubr.msk.bf16.vlgmr.msra.gmra.mrb[0].mxu0 %vm295_vm1, %v710_v5  ;;  %670 = vmatmul.mubr.msk.bf16.vlgmr.msra.gmra.mrb[0].mxu1 %vm295_vm1, %v712_v7 }
  0x18   : > { %v425_v8 = vld [vmem:[%s804_s7] sm:$0xff] }
  0xe6   : > { %v667_v9 = vpop.f32.mrb[0].mxu0  ;;  %v671_v10 = vpop.f32.mrb[0].mxu1 }
  0xe7   : > { %v646_v11 = vpack.c.bf16 %v667_v9, %v667_v9  ;;  %v346_v12 = vpop.f32.mrb[1].mxu0  ;;  %v650_v13 = vpack.c.bf16 %v671_v10, %v671_v10  ;;  %v362_v14 = vpop.f32.mrb[1].mxu1  ;;  %v453_v19 = vmul.f32 %v667_v9, %v667_v9  ;;  %v430_v27 = vsel %vm422_vm2, %v667_v9, 0.0 }
  0xe8   : > { %v644_v15 = vpack.c.bf16 %v346_v12, %v346_v12  ;;  %v451_v16 = vmul.f32 %v346_v12, %v346_v12  ;;  %v668_v17 = vpop.f32.mrb[2].mxu0  ;;  %v672_v18 = vpop.f32.mrb[2].mxu1  ;;  %v427_v23 = vsel %vm422_vm2, %v346_v12, 0.0  ;;  %v648_v30 = vpack.c.bf16 %v362_v14, %v362_v14 }
  0xe9   : > { %412 = vst.msk [vmem:[%s818_s13 + $0x8] sm:$0xf] %vm409_vm3, %v646_v11  ;;  %v647_v20 = vpack.c.bf16 %v668_v17, %v668_v17  ;;  %v349_v21 = vpop.f32.mrb[3].mxu0  ;;  %416 = vst.msk [vmem:[%s818_s13 + $0x18] sm:$0xf] %vm409_vm3, %v650_v13  ;;  %v365_v22 = vpop.f32.mrb[3].mxu1  ;;  %v454_v28 = vmul.f32 %v668_v17, %v668_v17  ;;  %v455_v33 = vmul.f32 %v362_v14, %v362_v14 }
  0xea   : > { %410 = vst.msk [vmem:[%s818_s13] sm:$0xf] %vm409_vm3, %v644_v15  ;;  %v645_v24 = vpack.c.bf16 %v349_v21, %v349_v21  ;;  %v428_v25 = vsel %vm422_vm2, %v349_v21, 0.0  ;;  %v452_v26 = vmul.f32 %v349_v21, %v349_v21  ;;  %v459_v31 = vsel %vm422_vm2, %v451_v16, 0.0  ;;  %414 = vst.msk [vmem:[%s818_s13 + $0x10] sm:$0xf] %vm409_vm3, %v648_v30 }
  0xeb   : > { %413 = vst.msk [vmem:[%s818_s13 + $0xc] sm:$0xf] %vm409_vm3, %v647_v20  ;;  %v429_v29 = vadd.f32 %v428_v25, %v427_v23  ;;  %v651_v34 = vpack.c.bf16 %v672_v18, %v672_v18  ;;  %v462_v37 = vsel %vm422_vm2, %v453_v19, 0.0  ;;  %v432_v38 = vsel %vm422_vm2, %v668_v17, 0.0  ;;  %v450_v11 = vld [vmem:[%s809_s10] sm:$0xff] }
  0xec   : > { %411 = vst.msk [vmem:[%s818_s13 + $0x4] sm:$0xf] %vm409_vm3, %v645_v24  ;;  %v460_v32 = vsel %vm422_vm2, %v452_v26, 0.0  ;;  %v434_v39 = vsel %vm422_vm2, %v362_v14, 0.0  ;;  %v649_v40 = vpack.c.bf16 %v365_v22, %v365_v22  ;;  %v464_v43 = vsel %vm422_vm2, %v454_v28, 0.0 }
  0xed   : > { %v431_v35 = vadd.f32 %v430_v27, %v429_v29  ;;  %v461_v36 = vadd.f32 %v460_v32, %v459_v31  ;;  %417 = vst.msk [vmem:[%s818_s13 + $0x1c] sm:$0xf] %vm409_vm3, %v651_v34  ;;  %v466_v44 = vsel %vm422_vm2, %v455_v33, 0.0  ;;  %v456_v45 = vmul.f32 %v365_v22, %v365_v22 }
  0xee   : > { %415 = vst.msk [vmem:[%s818_s13 + $0x14] sm:$0xf] %vm409_vm3, %v649_v40  ;;  %v457_v48 = vmul.f32 %v671_v10, %v671_v10  ;;  %v436_v49 = vsel %vm422_vm2, %v365_v22, 0.0  ;;  %v438_v52 = vsel %vm422_vm2, %v671_v10, 0.0  ;;  %v458_v53 = vmul.f32 %v672_v18, %v672_v18 }
  0xef   : > { %v463_v41 = vadd.f32 %v462_v37, %v461_v36  ;;  %v433_v42 = vadd.f32 %v432_v38, %v431_v35  ;;  %v468_v54 = vsel %vm422_vm2, %v456_v45, 0.0  ;;  %v440_v58 = vsel %vm422_vm2, %v672_v18, 0.0 }
  0xf0   : > { %v470_v57 = vsel %vm422_vm2, %v457_v48, 0.0  ;;  %v472_v61 = vsel %vm422_vm2, %v458_v53, 0.0 }
  0xf1   : > { %v435_v46 = vadd.f32 %v434_v39, %v433_v42  ;;  %v465_v47 = vadd.f32 %v464_v43, %v463_v41 }
  0xf3   : > { %v467_v50 = vadd.f32 %v466_v44, %v465_v47  ;;  %v437_v51 = vadd.f32 %v436_v49, %v435_v46 }
  0xf5   : > { %v439_v55 = vadd.f32 %v438_v52, %v437_v51  ;;  %v469_v56 = vadd.f32 %v468_v54, %v467_v50 }
  0xf7   : > { %v441_v59 = vadd.f32 %v440_v58, %v439_v55  ;;  %v471_v60 = vadd.f32 %v470_v57, %v469_v56 }
  0xf9   : > { %v442_v62 = vrot.slane %v441_v59, 4  ;;  %v473_v63 = vadd.f32 %v472_v61, %v471_v60 }
  0xfb   : > { %v443_v0 = vadd.f32 %v442_v62, %v441_v59  ;;  %v474_v1 = vrot.slane %v473_v63, 4 }
  0xfd   : > { %v444_v2 = vrot.slane %v443_v0, 2  ;;  %v475_v3 = vadd.f32 %v474_v1, %v473_v63 }
  0xff   : > { %v445_v4 = vadd.f32 %v444_v2, %v443_v0  ;;  %v476_v5 = vrot.slane %v475_v3, 2 }
 0x101   : > { %v446_v6 = vrot.slane %v445_v4, 1  ;;  %v477_v7 = vadd.f32 %v476_v5, %v475_v3 }
 0x103   : > { %v447_v9 = vadd.f32 %v446_v6, %v445_v4  ;;  %v478_v10 = vrot.slane %v477_v7, 1 }
 0x105   : > { %v448_v12 = vadd.f32 %v447_v9, %v425_v8  ;;  %v479_v13 = vadd.f32 %v478_v10, %v477_v7 }
 0x107   : > { %449 = vst.msk [vmem:[%s804_s7] sm:$0xff] %vm422_vm2, %v448_v12  ;;  %v480_v14 = vadd.f32 %v479_v13, %v450_v11 }
 0x109   : > { %481 = vst.msk [vmem:[%s809_s10] sm:$0xff] %vm422_vm2, %v480_v14 }
 0x10a PF: > { %s15_s17 = sadd.s32 1, %s735_s17   ;;  %s872_s15 = smov %s731_s16 }
 0x10b   : > { %p12_p6 = scmp.ge.s32.totalorder %s15_s17, 4   ;;  %s873_s16 = smov %s875_s18 }
 0x10d   :  { %14 = sbr.rel (!%p12_p6) target bundleno = 2 (0x2), region = 86 }

</bundles_post_ra>
